<compile_context>
chip_gen: v6e
topology: v6e:2x2x1
jax: 0.10.0
libtpu: 0.0.40
codegen_flags: <defaults>
</compile_context>

<pallas_src>
import math

import jax
import jax.numpy as jnp
from jax.experimental import pallas as pl
from jax.experimental.pallas import tpu as pltpu


_INV_SQRT2 = 1.0 / math.sqrt(2.0)


def _gelu_exact(y):
    # Exact erf-based GELU, matching the PyTorch reference `gelu`.
    return y * 0.5 * (1.0 + jax.lax.erf(y * _INV_SQRT2))


# ----------------------------------------------------------------------------
# Kernels
# ----------------------------------------------------------------------------
def _fused_kernel(x_ref, w_ref, b_ref, o_ref):
    """Single-K-block path: o = gelu(x @ w + b) for one (tm, tn) tile."""
    y = jnp.dot(x_ref[...], w_ref[...], preferred_element_type=jnp.float32)
    y = y + b_ref[...].astype(jnp.float32)
    o_ref[...] = _gelu_exact(y).astype(o_ref.dtype)


def _ktiled_kernel(x_ref, w_ref, b_ref, o_ref, acc_ref):
    """K-tiled path (large Din): f32 VMEM accumulator across the K grid axis,
    bias + erf-GELU fused into the final K step."""
    k = pl.program_id(2)

    @pl.when(k == 0)
    def _init():
        acc_ref[...] = jnp.zeros_like(acc_ref)

    acc_ref[...] += jnp.dot(x_ref[...], w_ref[...],
                            preferred_element_type=jnp.float32)

    @pl.when(k == pl.num_programs(2) - 1)
    def _finalize():
        y = acc_ref[...] + b_ref[...].astype(jnp.float32)
        o_ref[...] = _gelu_exact(y).astype(o_ref.dtype)


# ----------------------------------------------------------------------------
# Tile selection
# ----------------------------------------------------------------------------
def _align_down(v, a):
    return max(a, (v // a) * a)


def _vmem_capacity_bytes():
    try:
        return int(pltpu.get_tpu_info().vmem_capacity_bytes)
    except Exception:
        return 64 << 20  # conservative (v7x-sized) fallback


def _choose_tiles(M, Din, Dout, x_dtype, w_dtype, out_dtype):
    xb = jnp.dtype(x_dtype).itemsize
    wb = jnp.dtype(w_dtype).itemsize
    ob = jnp.dtype(out_dtype).itemsize
    sub = {1: 32, 2: 16, 4: 8}.get(xb, 8)  # sublane packing of x/out dtype

    cap = _vmem_capacity_bytes()
    # ~40 MiB working-set budget on v7x (64 MiB VMEM), 48 MiB on v5e/v6e (128 MiB).
    budget = min(cap * 5 // 8, 48 << 20)

    # K axis: collapse entirely for BERT-sized Din; otherwise pick an exact
    # 128-aligned divisor so no unspecified block padding is accumulated.
    if Din <= 2048:
        tk = Din
    else:
        tk = None
        t = (min(512, Din) // 128) * 128
        while t >= 128:
            if Din % t == 0:
                tk = t
                break
            t -= 128
        if tk is None:
            tk = Din
    k_collapsed = (tk == Din)

    # M axis: full dim if it fits the target, else a sublane-aligned tile and a
    # ragged (masked) last block.  N axis: full Dout so x streams once.
    tm = M if M <= 1024 else _align_down(1024, sub)
    tn = Dout

    def footprint(tm_, tn_):
        f = 2 * tm_ * tk * xb            # x double buffer
        f += 2 * tk * tn_ * wb           # w double buffer
        f += 2 * tn_ * 4                 # bias (tiny)
        f += 2 * tm_ * tn_ * ob          # out double buffer
        if not k_collapsed:
            f += tm_ * tn_ * 4           # f32 accumulator scratch
        f += 2 * tm_ * tn_ * 4           # epilogue f32 temps headroom
        return f

    # Shrink order: tm down to 256, then tn down to 512, then tm, then tn.
    while footprint(tm, tn) > budget:
        if tm != M and tm > max(256, sub):
            tm = _align_down(tm // 2, sub)
        elif tn > 512 and tn > 128:
            tn = max(128, _align_down(tn // 2, 128))
        elif tm != M and tm > sub:
            tm = _align_down(tm // 2, sub)
        elif tn > 128:
            tn = max(128, _align_down(tn // 2, 128))
        else:
            break

    return tm, tn, tk, k_collapsed, footprint(tm, tn), cap


# ----------------------------------------------------------------------------
# Wrapper
# ----------------------------------------------------------------------------
def bert_intermediate(x, w, b):
    """y = gelu(x @ w + b).  x: (..., Din), w: (Din, Dout), b: (Dout,)."""
    Din = x.shape[-1]
    Dout = w.shape[1]
    x2d = x.reshape(-1, Din)
    M = x2d.shape[0]
    b2d = b.reshape(1, Dout)

    tm, tn, tk, k_collapsed, fp, cap = _choose_tiles(
        M, Din, Dout, x2d.dtype, w.dtype, x2d.dtype)

    grid_m = pl.cdiv(M, tm)
    grid_n = pl.cdiv(Dout, tn)

    # Raise the scoped-VMEM limit so the compiler accepts the large reuse tiles.
    vmem_limit = int(min(cap - (2 << 20), max(2 * fp, 32 << 20)))
    vmem_limit = max(vmem_limit, fp + (4 << 20))
    vmem_limit = min(vmem_limit, cap)

    xb = jnp.dtype(x2d.dtype).itemsize
    wb = jnp.dtype(w.dtype).itemsize
    cost = pl.CostEstimate(
        flops=2 * M * Din * Dout,
        transcendentals=M * Dout,  # erf in the GELU epilogue
        bytes_accessed=(M * Din) * xb + (Din * Dout + Dout) * wb
                       + (M * Dout) * xb,
    )

    if k_collapsed:
        # grid = (M tiles, Dout tiles); bias resident when tn == Dout.
        if tn == Dout:
            b_spec = pl.BlockSpec((1, Dout), lambda i, j: (0, 0))
        else:
            b_spec = pl.BlockSpec((1, tn), lambda i, j: (0, j))
        out2d = pl.pallas_call(
            _fused_kernel,
            out_shape=jax.ShapeDtypeStruct((M, Dout), x2d.dtype),
            grid=(grid_m, grid_n),
            in_specs=[
                pl.BlockSpec((tm, Din), lambda i, j: (i, 0)),   # x
                pl.BlockSpec((Din, tn), lambda i, j: (0, j)),   # w
                b_spec,                                         # b
            ],
            out_specs=pl.BlockSpec((tm, tn), lambda i, j: (i, j)),
            compiler_params=pltpu.CompilerParams(
                dimension_semantics=("parallel", "parallel"),
                vmem_limit_bytes=vmem_limit),
            cost_estimate=cost,
        )(x2d, w, b2d)
    else:
        grid_k = Din // tk  # exact divisor by construction
        if tn == Dout:
            b_spec = pl.BlockSpec((1, Dout), lambda i, j, k: (0, 0))
        else:
            b_spec = pl.BlockSpec((1, tn), lambda i, j, k: (0, j))
        out2d = pl.pallas_call(
            _ktiled_kernel,
            out_shape=jax.ShapeDtypeStruct((M, Dout), x2d.dtype),
            grid=(grid_m, grid_n, grid_k),
            in_specs=[
                pl.BlockSpec((tm, tk), lambda i, j, k: (i, k)),  # x
                pl.BlockSpec((tk, tn), lambda i, j, k: (k, j)),  # w
                b_spec,                                          # b
            ],
            out_specs=pl.BlockSpec((tm, tn), lambda i, j, k: (i, j)),
            scratch_shapes=[pltpu.VMEM((tm, tn), jnp.float32)],
            compiler_params=pltpu.CompilerParams(
                dimension_semantics=("parallel", "parallel", "arbitrary"),
                vmem_limit_bytes=vmem_limit),
            cost_estimate=cost,
        )(x2d, w, b2d)

    return out2d.reshape(x.shape[:-1] + (Dout,))


# ----------------------------------------------------------------------------
# Pure-JAX reference (for correctness check)
# ----------------------------------------------------------------------------
def _reference(x, w, b):
    y = jnp.dot(x.astype(jnp.float32), w.astype(jnp.float32),
                preferred_element_type=jnp.float32) + b.astype(jnp.float32)
    return _gelu_exact(y)


# ----------------------------------------------------------------------------
# Main
# ----------------------------------------------------------------------------
if __name__ == "__main__":
    key = jax.random.PRNGKey(0)
    ks = jax.random.split(key, 9)

    # --- small config consistent with the module (batch=2, seq=8, hidden=32,
    #     intermediate=64), f32, single-tile fused path ---
    N, L, HIDDEN, INTER = 2, 8, 32, 64
    x = jax.random.normal(ks[0], (N, L, HIDDEN), jnp.float32)
    w = jax.random.normal(ks[1], (HIDDEN, INTER), jnp.float32) * 0.02
    b = jax.random.normal(ks[2], (INTER,), jnp.float32) * 0.02

    y = jax.block_until_ready(bert_intermediate(x, w, b))
    y_ref = _reference(x, w, b)
    assert y.shape == (N, L, INTER), y.shape
    assert bool(jnp.all(jnp.isfinite(y)))
    assert bool(jnp.allclose(y, y_ref, atol=1e-5, rtol=1e-5))

    # --- bf16, ragged M across multiple row tiles, K collapsed (Din <= 2048),
    #     full-Dout output tile (x streamed once) ---
    M2, D2, I2 = 1100, 1024, 1024
    x2 = jax.random.normal(ks[3], (M2, D2), jnp.float32).astype(jnp.bfloat16)
    w2 = (jax.random.normal(ks[4], (D2, I2), jnp.float32) * 0.02).astype(jnp.bfloat16)
    b2 = (jax.random.normal(ks[5], (I2,), jnp.float32) * 0.02).astype(jnp.bfloat16)

    y2 = jax.block_until_ready(bert_intermediate(x2, w2, b2))
    y2_ref = _reference(x2, w2, b2)
    assert y2.shape == (M2, I2), y2.shape
    assert bool(jnp.all(jnp.isfinite(y2.astype(jnp.float32))))
    assert bool(jnp.allclose(y2.astype(jnp.float32), y2_ref, atol=2e-2, rtol=2e-2))

    # --- bf16, large Din (> 2048): exercises the K-tiled f32-accumulator path
    #     with pl.when init/finalize ---
    M3, D3, I3 = 256, 4096, 512
    x3 = jax.random.normal(ks[6], (M3, D3), jnp.float32).astype(jnp.bfloat16)
    w3 = (jax.random.normal(ks[7], (D3, I3), jnp.float32) * 0.02).astype(jnp.bfloat16)
    b3 = (jax.random.normal(ks[8], (I3,), jnp.float32) * 0.02).astype(jnp.bfloat16)

    y3 = jax.block_until_ready(bert_intermediate(x3, w3, b3))
    y3_ref = _reference(x3, w3, b3)
    assert y3.shape == (M3, I3), y3.shape
    assert bool(jnp.all(jnp.isfinite(y3.astype(jnp.float32))))
    assert bool(jnp.allclose(y3.astype(jnp.float32), y3_ref, atol=2e-2, rtol=2e-2))

    print("KERNEL_OK")
</pallas_src>

<mosaic_0001>
module attributes {stable_mosaic.version = 11 : i64} {
  func.func @_fused_kernel(%arg0: i32, %arg1: i32, %arg2: memref<16x32xf32, #tpu.memory_space<vmem>>, %arg3: memref<32x64xf32, #tpu.memory_space<vmem>>, %arg4: memref<1x64xf32, #tpu.memory_space<vmem>>, %arg5: memref<16x64xf32, #tpu.memory_space<vmem>>) attributes {dimension_semantics = [#tpu.dimension_semantics<parallel>, #tpu.dimension_semantics<parallel>], iteration_bounds = array<i64: 1, 1>, scalar_prefetch = 0 : i64, scratch_operands = 0 : i64, tpu.core_type = #tpu.core_type<tc>, window_params = [{transform_indices = @transform_0, window_bounds = array<i64: 16, 32>}, {transform_indices = @transform_1, window_bounds = array<i64: 32, 64>}, {pipeline_mode = #tpu.pipeline_mode<synchronous>, transform_indices = @transform_2, window_bounds = array<i64: 1, 64>}, {transform_indices = @transform_3, window_bounds = array<i64: 16, 64>}]} {
    %c0 = arith.constant 0 : index
    %c0_0 = arith.constant 0 : index
    %0 = vector.load %arg2[%c0, %c0_0] : memref<16x32xf32, #tpu.memory_space<vmem>>, vector<16x32xf32>
    %c0_1 = arith.constant 0 : index
    %c0_2 = arith.constant 0 : index
    %1 = vector.load %arg3[%c0_1, %c0_2] : memref<32x64xf32, #tpu.memory_space<vmem>>, vector<32x64xf32>
    %cst = arith.constant dense<0.000000e+00> : vector<16x64xf32>
    %2 = tpu.matmul %0, %1, %cst {dimension_numbers = #tpu.dot_dimension_numbers<[1], [0], [0], [1], [0, 0, 1, 1], [], []>} : vector<16x32xf32>, vector<32x64xf32>, vector<16x64xf32> -> vector<16x64xf32>
    %c0_3 = arith.constant 0 : index
    %c0_4 = arith.constant 0 : index
    %3 = vector.load %arg4[%c0_3, %c0_4] : memref<1x64xf32, #tpu.memory_space<vmem>>, vector<1x64xf32>
    %4 = vector.broadcast %3 : vector<1x64xf32> to vector<16x64xf32>
    %5 = arith.addf %2, %4 : vector<16x64xf32>
    %cst_5 = arith.constant 5.000000e-01 : f32
    %6 = vector.broadcast %cst_5 : f32 to vector<16x64xf32>
    %7 = arith.mulf %5, %6 : vector<16x64xf32>
    %cst_6 = arith.constant 0.707106769 : f32
    %8 = vector.broadcast %cst_6 : f32 to vector<16x64xf32>
    %9 = arith.mulf %5, %8 : vector<16x64xf32>
    %10 = math.erf %9 : vector<16x64xf32>
    %cst_7 = arith.constant 1.000000e+00 : f32
    %11 = vector.broadcast %cst_7 : f32 to vector<16x64xf32>
    %12 = arith.addf %11, %10 : vector<16x64xf32>
    %13 = arith.mulf %7, %12 : vector<16x64xf32>
    %c0_8 = arith.constant 0 : index
    %c0_9 = arith.constant 0 : index
    %14 = vector.load %arg5[%c0_8, %c0_9] : memref<16x64xf32, #tpu.memory_space<vmem>>, vector<16x64xf32>
    tpu.vector_store %arg5[%c0_8, %c0_9], %13 {strides = array<i32>} : memref<16x64xf32, #tpu.memory_space<vmem>>, vector<16x64xf32>,
    return
  }
  func.func @transform_0(%arg0: i32, %arg1: i32) -> (i32, i32) {
    %c0_i32 = arith.constant 0 : i32
    %c0_i32_0 = arith.constant 0 : i32
    return %arg0, %c0_i32 : i32, i32
  }
  func.func @transform_1(%arg0: i32, %arg1: i32) -> (i32, i32) {
    %c0_i32 = arith.constant 0 : i32
    %c0_i32_0 = arith.constant 0 : i32
    return %c0_i32, %arg1 : i32, i32
  }
  func.func @transform_2(%arg0: i32, %arg1: i32) -> (i32, i32) {
    %c0_i32 = arith.constant 0 : i32
    %c0_i32_0 = arith.constant 0 : i32
    %c0_i32_1 = arith.constant 0 : i32
    return %c0_i32, %c0_i32_0 : i32, i32
  }
  func.func @transform_3(%arg0: i32, %arg1: i32) -> (i32, i32) {
    %c0_i32 = arith.constant 0 : i32
    return %arg0, %arg1 : i32, i32
  }
}

</mosaic_0001>

<bundles_post_ra>
// kernel: tpu_custom_call.1
= control target key start
LH: loop header
LB: loop body
LE: loop exit
PB: predicated region body
PF: predicated region fallthrough
CT: control target
= control target key end

     0   :  { %8 = vsyncpa [#allocation3], 0  ;;  %s312_s0 = inlined_call_operand.hbm [shape: f32[16,32], index: 0, kind: input, shape index: {}]   ;;  %s313_s1 = inlined_call_operand.hbm [shape: f32[32,64], index: 1, kind: input, shape index: {}]   ;;  %s314_s2 = inlined_call_operand.vmem [shape: f32[1,64], index: 2, kind: input, shape index: {}]   ;;  %s315_s3 = inlined_call_operand.hbm [shape: f32[16,64], index: 3, kind: output, shape index: {}]  }
   0x1   :  { %9 = vsyncpa [#allocation6], 0 }
   0x2   :  { %10 = vsyncpa [#allocation4], 0  ;;  %s264_s12 = smov [#allocation2]  }
   0x3   :  { %s16_s13 = sshll.u32 %s264_s12, 4  ;;  %s17_s13 = int_to_ptr.vmem [resolvable:$true] %s16_s13 }
   0x4   :  { %s206_s14 = scalar_lea.vmem %s17_s13, 256  ;;  %p211_p1 = scmp.lt.s32.totalorder %s17_s13, %s17_s13 }
   0x5   :  { %p207_p0 = scmp.ne.s32.totalorder %s17_s13, %s206_s14  ;;  %p212_p2 = scmp.lt.s32.totalorder %s206_s14, %s206_s14 }
   0x7   :  { %p213_p3 = por %p212_p2, %p211_p1 }
   0x9   :  { %p214_p4 = pnand %p213_p3, %p207_p0 }
   0xb   :  { %217 = shalt.err (!%p214_p4)
}
   0xc   :  { %s265_s15 = smov 128   ;;  %s266_s16 = smov 8  }
   0xd   :  { %22 = dma.hbm_to_vmem [thread:$0]  %s312_s0, 256, %s17_s13, [#allocation3], %s265_s15, %s265_s15, %s266_s16  }
   0xe   :  { %s267_s19 = smov [#allocation5]  }
   0xf   :  { %s28_s20 = sshll.u32 %s267_s19, 4  ;;  %s29_s20 = int_to_ptr.vmem [resolvable:$true] %s28_s20 }
  0x10   :  { %s226_s21 = scalar_lea.vmem %s29_s20, 512  ;;  %p231_p6 = scmp.lt.s32.totalorder %s29_s20, %s29_s20 }
  0x11   :  { %p227_p5 = scmp.ne.s32.totalorder %s29_s20, %s226_s21  ;;  %p232_p7 = scmp.lt.s32.totalorder %s226_s21, %s226_s21 }
  0x13   :  { %p233_p8 = por %p232_p7, %p231_p6 }
  0x15   :  { %p234_p9 = pnand %p233_p8, %p227_p5 }
  0x17   :  { %237 = shalt.err (!%p234_p9)
}
  0x18   :  { %34 = dma.hbm_to_vmem [thread:$0]  %s313_s1, 512, %s29_s20, [#allocation6], %s265_s15, %s265_s15, %s266_s16  }
  0x19   :  { %258 = dma.done.wait [#allocation3], 256  }
  0x1a   :  { %259 = vsyncadd [#allocation3], 4294967040 }
  0x1b   :  { %260 = dma.done.wait [#allocation6], 512  }
  0x1c   :  { %261 = vsyncadd [#allocation6], 4294966784  ;;  %vm56_vm0 = vcmask 261120   ;;  %v48_v0 = vld [vmem:[#allocation5 + $0x18] sm:$0xff]  ;;  %v47_v1 = vld [vmem:[#allocation5 + $0x10] sm:$0xff]  ;;  %vm148_vm1 = vcmask 523264  }
  0x1d   :  { %178 = vmatprep.subr.mxu0 %v48_v0  ;;  %v43_v2 = vld [vmem:[#allocation2] sm:$0xff]  ;;  %v46_v3 = vld [vmem:[#allocation5 + $0x8] sm:$0xff]  ;;  %v45_v4 = vld [vmem:[#allocation5] sm:$0xff]  ;;  %s268_s24 = smov [#allocation7]  }
  0x1e   :  { %179 = vmatpush3.msra.mxu0 %v48_v0  ;;  %186 = vmatprep.mubr.msk.f32.mxu0 %vm56_vm0, %v43_v2  ;;  %v44_v5 = vld [vmem:[#allocation2 + $0x8] sm:$0xff]  ;;  %v169_v6 = vld [vmem:[%s314_s2] ss:$0 sm:$0xff]  ;;  %s156_s25 = sshll.u32 %s268_s24, 4  ;;  %s157_s25 = int_to_ptr.vmem [resolvable:$true] %s156_s25 }
  0x1f   :  { %180 = vmatprep.subr.mxu0 %v47_v1  ;;  %s238_s2 = scalar_lea.vmem %s157_s25, 256  ;;  %p243_p11 = scmp.lt.s32.totalorder %s157_s25, %s157_s25 }
  0x20   :  { %181 = vmatpush3.msra.mxu0 %v47_v1  ;;  %p239_p10 = scmp.ne.s32.totalorder %s157_s25, %s238_s2  ;;  %p244_p12 = scmp.lt.s32.totalorder %s238_s2, %s238_s2 }
  0x21   :  { %182 = vmatprep.subr.mxu0 %v46_v3 }
  0x22   :  { %183 = vmatpush3.msra.mxu0 %v46_v3  ;;  %p245_p13 = por %p244_p12, %p243_p11 }
  0x23   :  { %184 = vmatprep.subr.mxu0 %v45_v4 }
  0x24   :  { %185 = vmatpush3.msra.mxu0 %v45_v4  ;;  %p246_p0 = pnand %p245_p13, %p239_p10 }
  0x25   :  { %187 = vmatmul.mubr.msk.f32.vlgmr.msra.gmra.mxu0 %vm56_vm0, %v44_v5 }
  0xe5   :  { %v188_v7 = vpop.f32.mrf.mxu0 }
  0xe6   :  { %v135_v8 = vadd.f32 %v188_v7, %v169_v6 }
  0xe7   :  { %v129_v9 = vpop.f32.mrf.mxu0 }
  0xe8   :  { %v141_v10 = vmul.f32 0.70710677, %v135_v8  ;;  %v130_v11 = vadd.f32 %v169_v6, %v129_v9  ;;  %v139_v14 = vmul.f32 0.5, %v135_v8 }
  0xea   :  { %194 = verf.f32 %v141_v10  ;;  %v140_v12 = vmul.f32 0.70710677, %v130_v11  ;;  %v138_v18 = vmul.f32 0.5, %v130_v11 }
  0xec   :  { %196 = verf.f32 %v140_v12 }
  0xf7   :  { %v195_v13 = vpop.eup %194 }
  0xf8   :  { %v145_v15 = vadd.f32 1.0, %v195_v13 }
  0xf9   :  { %v197_v16 = vpop.eup %196 }
  0xfa   :  { %v147_v17 = vmul.f32 %v145_v15, %v139_v14  ;;  %v144_v19 = vadd.f32 1.0, %v197_v16 }
  0xfc   :  { %v146_v20 = vmul.f32 %v144_v19, %v138_v18  ;;  %150 = vst.msk [vmem:[#allocation7 + $0x8] sm:$0xff] %vm148_vm1, %v147_v17 }
  0xfe   :  { %149 = vst.msk [vmem:[#allocation7] sm:$0xff] %vm148_vm1, %v146_v20 }
  0xff   :  { %249 = shalt.err (!%p246_p0)
}
 0x100   :  { %162 = dma.vmem_to_hbm [thread:$0]  %s157_s25, 256, %s315_s3, [#allocation4], %s265_s15, %s265_s15, %s266_s16  }
 0x101   :  { %262 = dma.done.wait [#allocation4], 256  }
 0x102   :  { %263 = vsyncadd [#allocation4], 4294967040 }
 0x103   :  { %166 = vsyncpa [#allocation3], 1 }
 0x104   :  { %167 = vsyncpa [#allocation6], 1 }
 0x105   :  { %168 = vsyncpa [#allocation4], 1 }

</bundles_post_ra>
